<compile_context>
chip_gen: v7x
topology: tpu7x:2x2x1
jax: 0.10.0
libtpu: 0.0.40
codegen_flags: <defaults>
</compile_context>

<pallas_src>
import jax
import jax.numpy as jnp
from jax.experimental import pallas as pl
from jax.experimental.pallas import tpu as pltpu

LANE = 128
# Hidden widths 25 / 75 / 200 lane-padded for dense MXU passes.
H1, H2, H3 = 128, 128, 256


def _round_up(x, m):
    return (x + m - 1) // m * m


def _cdiv(a, b):
    return -(-a // b)


def mlp_kernel(x_ref,
               w1_ref, b1_ref,
               w2_ref, b2_ref,
               w3_ref, b3_ref,
               w4_ref, b4_ref,
               o_ref):
    # One batch tile per grid step. Four fused matmuls (bf16 in, f32 acc on the
    # MXU) + bias + ReLU (f32 on the VPU). Weights are VMEM-resident across the
    # whole grid (constant index_map).
    x = x_ref[...]                                            # bf16 (TB, D)

    h = jnp.dot(x, w1_ref[...], preferred_element_type=jnp.float32) + b1_ref[...]
    h = jnp.maximum(h, 0.0)                                   # dropout1: identity (eval)

    h = jnp.dot(h.astype(jnp.bfloat16), w2_ref[...],
                preferred_element_type=jnp.float32) + b2_ref[...]
    h = jnp.maximum(h, 0.0)                                   # dropout2: identity (eval)

    h = jnp.dot(h.astype(jnp.bfloat16), w3_ref[...],
                preferred_element_type=jnp.float32) + b3_ref[...]
    h = jnp.maximum(h, 0.0)                                   # dropout3: identity (eval)

    h = jnp.dot(h.astype(jnp.bfloat16), w4_ref[...],
                preferred_element_type=jnp.float32) + b4_ref[...]
    h = jnp.maximum(h, 0.0)                                   # dropout4: identity (eval)

    o_ref[...] = h.astype(o_ref.dtype)                        # lane-dense bf16 store


def mlp_forward(x, params, *, block_rows=2048):
    """Run the fused, batch-tiled MLP Pallas kernel.

    x: (B, D) float32
    params: dict w1,b1,...,w4,b4 ; wi has shape (in, out), bi has shape (1, out).
    Returns (B, nb_classes) float32 (bf16 compute precision).
    """
    B, D = x.shape
    C = params["w4"].shape[1]
    C_pad = _round_up(C, LANE)

    # --- Parameter prep: zero-pad to lane-aligned shapes, weights -> bf16. ---
    def pad_w(w, in_pad, out_pad):
        return jnp.pad(w, ((0, in_pad - w.shape[0]),
                           (0, out_pad - w.shape[1]))).astype(jnp.bfloat16)

    def pad_b(b, out_pad):
        return jnp.pad(b, ((0, 0), (0, out_pad - b.shape[1])))   # stays f32

    w1 = pad_w(params["w1"], D, H1);     b1 = pad_b(params["b1"], H1)
    w2 = pad_w(params["w2"], H1, H2);    b2 = pad_b(params["b2"], H2)
    w3 = pad_w(params["w3"], H2, H3);    b3 = pad_b(params["b3"], H3)
    w4 = pad_w(params["w4"], H3, C_pad); b4 = pad_b(params["b4"], C_pad)

    # --- Batch tiling: equalized tiles, 16-row aligned (bf16 sublane packing),
    # even tile count when >1 so v7x's 2 TensorCores balance on "parallel". ---
    n_tiles = _cdiv(B, block_rows)
    if n_tiles > 1 and n_tiles % 2 == 1:
        n_tiles += 1
    TB = _round_up(_cdiv(B, n_tiles), 16)
    B_pad = n_tiles * TB

    xb = x.astype(jnp.bfloat16)
    if B_pad != B:
        xb = jnp.pad(xb, ((0, B_pad - B), (0, 0)))

    grid = (n_tiles,)

    # Weights/biases: full-shape blocks, constant index_map -> DMA'd once,
    # VMEM-resident for every grid step.
    def _resident(arr):
        return pl.BlockSpec(arr.shape, lambda i: (0,) * arr.ndim)

    in_specs = [
        pl.BlockSpec((TB, D), lambda i: (i, 0)),          # x, batch-tiled
        _resident(w1), _resident(b1),
        _resident(w2), _resident(b2),
        _resident(w3), _resident(b3),
        _resident(w4), _resident(b4),
    ]
    out_specs = pl.BlockSpec((TB, C_pad), lambda i: (i, 0))

    flops = 2 * B_pad * (D * H1 + H1 * H2 + H2 * H3 + H3 * C_pad)
    w_bytes = 2 * (D * H1 + H1 * H2 + H2 * H3 + H3 * C_pad) \
        + 4 * (H1 + H2 + H3 + C_pad)
    bytes_accessed = 2 * B_pad * (D + C_pad) + w_bytes

    out = pl.pallas_call(
        mlp_kernel,
        out_shape=jax.ShapeDtypeStruct((B_pad, C_pad), jnp.bfloat16),
        grid=grid,
        in_specs=in_specs,
        out_specs=out_specs,
        compiler_params=pltpu.CompilerParams(
            dimension_semantics=("parallel",),
        ),
        cost_estimate=pl.CostEstimate(
            flops=flops, transcendentals=0, bytes_accessed=bytes_accessed),
    )(xb, w1, b1, w2, b2, w3, b3, w4, b4)

    return out[:B, :C].astype(jnp.float32)


def init_params(key, input_dim, nb_classes):
    """Deterministic init mimicking torch.nn.Linear (uniform +-1/sqrt(fan_in))."""
    dims = [(input_dim, 25), (25, 75), (75, 200), (200, nb_classes)]
    params = {}
    for i, (fan_in, fan_out) in enumerate(dims, start=1):
        key, kw, kb = jax.random.split(key, 3)
        bound = 1.0 / (fan_in ** 0.5)
        params[f"w{i}"] = jax.random.uniform(
            kw, (fan_in, fan_out), jnp.float32, minval=-bound, maxval=bound)
        params[f"b{i}"] = jax.random.uniform(
            kb, (1, fan_out), jnp.float32, minval=-bound, maxval=bound)
    return params


def mlp_reference(x, params):
    """Pure-JAX f32 reference for correctness checking."""
    h = jnp.maximum(x @ params["w1"] + params["b1"], 0.0)
    h = jnp.maximum(h @ params["w2"] + params["b2"], 0.0)
    h = jnp.maximum(h @ params["w3"] + params["b3"], 0.0)
    h = jnp.maximum(h @ params["w4"] + params["b4"], 0.0)
    return h


if __name__ == "__main__":
    # TODO(synk): nn.Dropout in training mode (stochastic masking) is not
    # implemented; this kernel models the eval-mode forward (dropout = identity).
    key = jax.random.PRNGKey(0)
    key, kx = jax.random.split(key)

    batch = 8
    input_dim = 32     # input_shape[0]
    nb_classes = 10

    x = jax.random.normal(kx, (batch, input_dim), dtype=jnp.float32)
    params = init_params(key, input_dim, nb_classes)

    out = mlp_forward(x, params)
    out = jax.block_until_ready(out)

    ref = mlp_reference(x, params)
    assert out.shape == (batch, nb_classes)
    # bf16 matmul inputs / bf16 output store -> loose tolerance vs f32 reference.
    assert jnp.allclose(out, ref, atol=5e-2, rtol=5e-2), \
        float(jnp.max(jnp.abs(out - ref)))

    # Also exercise the multi-tile path (even grid, ragged batch).
    key, kx2 = jax.random.split(key)
    x_big = jax.random.normal(kx2, (2500, input_dim), dtype=jnp.float32)
    out_big = jax.block_until_ready(mlp_forward(x_big, params))
    ref_big = mlp_reference(x_big, params)
    assert out_big.shape == (2500, nb_classes)
    assert jnp.allclose(out_big, ref_big, atol=5e-2, rtol=5e-2), \
        float(jnp.max(jnp.abs(out_big - ref_big)))

    print("KERNEL_OK")
</pallas_src>

<mosaic_0001>
module attributes {stable_mosaic.version = 11 : i64} {
  func.func @mlp_kernel(%arg0: i32, %arg1: memref<16x32xbf16, #tpu.memory_space<vmem>>, %arg2: memref<32x128xbf16, #tpu.memory_space<vmem>>, %arg3: memref<1x128xf32, #tpu.memory_space<vmem>>, %arg4: memref<128x128xbf16, #tpu.memory_space<vmem>>, %arg5: memref<1x128xf32, #tpu.memory_space<vmem>>, %arg6: memref<128x256xbf16, #tpu.memory_space<vmem>>, %arg7: memref<1x256xf32, #tpu.memory_space<vmem>>, %arg8: memref<256x128xbf16, #tpu.memory_space<vmem>>, %arg9: memref<1x128xf32, #tpu.memory_space<vmem>>, %arg10: memref<16x128xbf16, #tpu.memory_space<vmem>>) attributes {dimension_semantics = [#tpu.dimension_semantics<parallel>], iteration_bounds = array<i64: 1>, scalar_prefetch = 0 : i64, scratch_operands = 0 : i64, tpu.core_type = #tpu.core_type<tc>, window_params = [{transform_indices = @transform_0, window_bounds = array<i64: 16, 32>}, {pipeline_mode = #tpu.pipeline_mode<synchronous>, transform_indices = @transform_1, window_bounds = array<i64: 32, 128>}, {pipeline_mode = #tpu.pipeline_mode<synchronous>, transform_indices = @transform_2, window_bounds = array<i64: 1, 128>}, {pipeline_mode = #tpu.pipeline_mode<synchronous>, transform_indices = @transform_3, window_bounds = array<i64: 128, 128>}, {pipeline_mode = #tpu.pipeline_mode<synchronous>, transform_indices = @transform_4, window_bounds = array<i64: 1, 128>}, {pipeline_mode = #tpu.pipeline_mode<synchronous>, transform_indices = @transform_5, window_bounds = array<i64: 128, 256>}, {pipeline_mode = #tpu.pipeline_mode<synchronous>, transform_indices = @transform_6, window_bounds = array<i64: 1, 256>}, {pipeline_mode = #tpu.pipeline_mode<synchronous>, transform_indices = @transform_7, window_bounds = array<i64: 256, 128>}, {pipeline_mode = #tpu.pipeline_mode<synchronous>, transform_indices = @transform_8, window_bounds = array<i64: 1, 128>}, {transform_indices = @transform_9, window_bounds = array<i64: 16, 128>}]} {
    %c0 = arith.constant 0 : index
    %c0_0 = arith.constant 0 : index
    %0 = vector.load %arg1[%c0, %c0_0] : memref<16x32xbf16, #tpu.memory_space<vmem>>, vector<16x32xbf16>
    %c0_1 = arith.constant 0 : index
    %c0_2 = arith.constant 0 : index
    %1 = vector.load %arg2[%c0_1, %c0_2] : memref<32x128xbf16, #tpu.memory_space<vmem>>, vector<32x128xbf16>
    %cst = arith.constant dense<0.000000e+00> : vector<16x128xf32>
    %2 = tpu.matmul %0, %1, %cst {dimension_numbers = #tpu.dot_dimension_numbers<[1], [0], [0], [1], [0, 0, 1, 1], [], []>} : vector<16x32xbf16>, vector<32x128xbf16>, vector<16x128xf32> -> vector<16x128xf32>
    %c0_3 = arith.constant 0 : index
    %c0_4 = arith.constant 0 : index
    %3 = vector.load %arg3[%c0_3, %c0_4] : memref<1x128xf32, #tpu.memory_space<vmem>>, vector<1x128xf32>
    %4 = vector.broadcast %3 : vector<1x128xf32> to vector<16x128xf32>
    %5 = arith.addf %2, %4 : vector<16x128xf32>
    %cst_5 = arith.constant 0.000000e+00 : f32
    %6 = vector.broadcast %cst_5 : f32 to vector<16x128xf32>
    %7 = arith.maximumf %5, %6 : vector<16x128xf32>
    %8 = arith.truncf %7 : vector<16x128xf32> to vector<16x128xbf16>
    %c0_6 = arith.constant 0 : index
    %c0_7 = arith.constant 0 : index
    %9 = vector.load %arg4[%c0_6, %c0_7] : memref<128x128xbf16, #tpu.memory_space<vmem>>, vector<128x128xbf16>
    %cst_8 = arith.constant dense<0.000000e+00> : vector<16x128xf32>
    %10 = tpu.matmul %8, %9, %cst_8 {dimension_numbers = #tpu.dot_dimension_numbers<[1], [0], [0], [1], [0, 0, 1, 1], [], []>} : vector<16x128xbf16>, vector<128x128xbf16>, vector<16x128xf32> -> vector<16x128xf32>
    %c0_9 = arith.constant 0 : index
    %c0_10 = arith.constant 0 : index
    %11 = vector.load %arg5[%c0_9, %c0_10] : memref<1x128xf32, #tpu.memory_space<vmem>>, vector<1x128xf32>
    %12 = vector.broadcast %11 : vector<1x128xf32> to vector<16x128xf32>
    %13 = arith.addf %10, %12 : vector<16x128xf32>
    %cst_11 = arith.constant 0.000000e+00 : f32
    %14 = vector.broadcast %cst_11 : f32 to vector<16x128xf32>
    %15 = arith.maximumf %13, %14 : vector<16x128xf32>
    %16 = arith.truncf %15 : vector<16x128xf32> to vector<16x128xbf16>
    %c0_12 = arith.constant 0 : index
    %c0_13 = arith.constant 0 : index
    %17 = vector.load %arg6[%c0_12, %c0_13] : memref<128x256xbf16, #tpu.memory_space<vmem>>, vector<128x256xbf16>
    %cst_14 = arith.constant dense<0.000000e+00> : vector<16x256xf32>
    %18 = tpu.matmul %16, %17, %cst_14 {dimension_numbers = #tpu.dot_dimension_numbers<[1], [0], [0], [1], [0, 0, 1, 1], [], []>} : vector<16x128xbf16>, vector<128x256xbf16>, vector<16x256xf32> -> vector<16x256xf32>
    %c0_15 = arith.constant 0 : index
    %c0_16 = arith.constant 0 : index
    %19 = vector.load %arg7[%c0_15, %c0_16] : memref<1x256xf32, #tpu.memory_space<vmem>>, vector<1x256xf32>
    %20 = vector.broadcast %19 : vector<1x256xf32> to vector<16x256xf32>
    %21 = arith.addf %18, %20 : vector<16x256xf32>
    %cst_17 = arith.constant 0.000000e+00 : f32
    %22 = vector.broadcast %cst_17 : f32 to vector<16x256xf32>
    %23 = arith.maximumf %21, %22 : vector<16x256xf32>
    %24 = arith.truncf %23 : vector<16x256xf32> to vector<16x256xbf16>
    %c0_18 = arith.constant 0 : index
    %c0_19 = arith.constant 0 : index
    %25 = vector.load %arg8[%c0_18, %c0_19] : memref<256x128xbf16, #tpu.memory_space<vmem>>, vector<256x128xbf16>
    %cst_20 = arith.constant dense<0.000000e+00> : vector<16x128xf32>
    %26 = tpu.matmul %24, %25, %cst_20 {dimension_numbers = #tpu.dot_dimension_numbers<[1], [0], [0], [1], [0, 0, 1, 1], [], []>} : vector<16x256xbf16>, vector<256x128xbf16>, vector<16x128xf32> -> vector<16x128xf32>
    %c0_21 = arith.constant 0 : index
    %c0_22 = arith.constant 0 : index
    %27 = vector.load %arg9[%c0_21, %c0_22] : memref<1x128xf32, #tpu.memory_space<vmem>>, vector<1x128xf32>
    %28 = vector.broadcast %27 : vector<1x128xf32> to vector<16x128xf32>
    %29 = arith.addf %26, %28 : vector<16x128xf32>
    %cst_23 = arith.constant 0.000000e+00 : f32
    %30 = vector.broadcast %cst_23 : f32 to vector<16x128xf32>
    %31 = arith.maximumf %29, %30 : vector<16x128xf32>
    %32 = arith.truncf %31 : vector<16x128xf32> to vector<16x128xbf16>
    %c0_24 = arith.constant 0 : index
    %c0_25 = arith.constant 0 : index
    %33 = vector.load %arg10[%c0_24, %c0_25] : memref<16x128xbf16, #tpu.memory_space<vmem>>, vector<16x128xbf16>
    tpu.vector_store %arg10[%c0_24, %c0_25], %32 {strides = array<i32>} : memref<16x128xbf16, #tpu.memory_space<vmem>>, vector<16x128xbf16>,
    return
  }
  func.func @transform_0(%arg0: i32) -> (i32, i32) {
    %c0_i32 = arith.constant 0 : i32
    %c0_i32_0 = arith.constant 0 : i32
    return %arg0, %c0_i32 : i32, i32
  }
  func.func @transform_1(%arg0: i32) -> (i32, i32) {
    %c0_i32 = arith.constant 0 : i32
    %c0_i32_0 = arith.constant 0 : i32
    %c0_i32_1 = arith.constant 0 : i32
    return %c0_i32, %c0_i32_0 : i32, i32
  }
  func.func @transform_2(%arg0: i32) -> (i32, i32) {
    %c0_i32 = arith.constant 0 : i32
    %c0_i32_0 = arith.constant 0 : i32
    %c0_i32_1 = arith.constant 0 : i32
    return %c0_i32, %c0_i32_0 : i32, i32
  }
  func.func @transform_3(%arg0: i32) -> (i32, i32) {
    %c0_i32 = arith.constant 0 : i32
    %c0_i32_0 = arith.constant 0 : i32
    %c0_i32_1 = arith.constant 0 : i32
    return %c0_i32, %c0_i32_0 : i32, i32
  }
  func.func @transform_4(%arg0: i32) -> (i32, i32) {
    %c0_i32 = arith.constant 0 : i32
    %c0_i32_0 = arith.constant 0 : i32
    %c0_i32_1 = arith.constant 0 : i32
    return %c0_i32, %c0_i32_0 : i32, i32
  }
  func.func @transform_5(%arg0: i32) -> (i32, i32) {
    %c0_i32 = arith.constant 0 : i32
    %c0_i32_0 = arith.constant 0 : i32
    %c0_i32_1 = arith.constant 0 : i32
    return %c0_i32, %c0_i32_0 : i32, i32
  }
  func.func @transform_6(%arg0: i32) -> (i32, i32) {
    %c0_i32 = arith.constant 0 : i32
    %c0_i32_0 = arith.constant 0 : i32
    %c0_i32_1 = arith.constant 0 : i32
    return %c0_i32, %c0_i32_0 : i32, i32
  }
  func.func @transform_7(%arg0: i32) -> (i32, i32) {
    %c0_i32 = arith.constant 0 : i32
    %c0_i32_0 = arith.constant 0 : i32
    %c0_i32_1 = arith.constant 0 : i32
    return %c0_i32, %c0_i32_0 : i32, i32
  }
  func.func @transform_8(%arg0: i32) -> (i32, i32) {
    %c0_i32 = arith.constant 0 : i32
    %c0_i32_0 = arith.constant 0 : i32
    %c0_i32_1 = arith.constant 0 : i32
    return %c0_i32, %c0_i32_0 : i32, i32
  }
  func.func @transform_9(%arg0: i32) -> (i32, i32) {
    %c0_i32 = arith.constant 0 : i32
    %c0_i32_0 = arith.constant 0 : i32
    return %arg0, %c0_i32 : i32, i32
  }
}

</mosaic_0001>

<bundles_post_ra>
// kernel: tpu_custom_call.1
= control target key start
LH: loop header
LB: loop body
LE: loop exit
PB: predicated region body
PF: predicated region fallthrough
CT: control target
= control target key end

     0   :  { %14 = vsyncpa [#allocation3], 0  ;;  %s1157_s0 = inlined_call_operand.hbm [shape: bf16[16,32], index: 0, kind: input, shape index: {}]   ;;  %s1158_s1 = inlined_call_operand.hbm [shape: bf16[32,128], index: 1, kind: input, shape index: {}]   ;;  %s1159_s2 = inlined_call_operand.vmem [shape: f32[1,128], index: 2, kind: input, shape index: {}]   ;;  %s1160_s3 = inlined_call_operand.hbm [shape: bf16[128,128], index: 3, kind: input, shape index: {}]   ;;  %s1161_s4 = inlined_call_operand.vmem [shape: f32[1,128], index: 4, kind: input, shape index: {}]   ;;  %s1162_s5 = inlined_call_operand.hbm [shape: bf16[128,256], index: 5, kind: input, shape index: {}]   ;;  %s1163_s6 = inlined_call_operand.vmem [shape: f32[1,256], index: 6, kind: input, shape index: {}]   ;;  %s1164_s7 = inlined_call_operand.hbm [shape: bf16[256,128], index: 7, kind: input, shape index: {}]   ;;  %s1165_s8 = inlined_call_operand.vmem [shape: f32[1,128], index: 8, kind: input, shape index: {}]   ;;  %s1166_s9 = inlined_call_operand.hbm [shape: bf16[16,128], index: 9, kind: output, shape index: {}]  }
   0x1   :  { %15 = vsyncpa [#allocation6], 0 }
   0x2   :  { %16 = vsyncpa [#allocation9], 0 }
   0x3   :  { %17 = vsyncpa [#allocation4], 0  ;;  %s981_s30 = smov [#allocation5]   ;;  %s982_s11 = smov [#allocation8]  }
   0x4   :  { %s35_s10 = sshll.u32 %s981_s30, 4  ;;  %s63_s12 = sshll.u32 %s982_s11, 4  ;;  %s36_s10 = int_to_ptr.vmem [resolvable:$true] %s35_s10  ;;  %s1044_s12 = int_to_ptr.vmem [resolvable:$true] %s63_s12 }
   0x5   :  { %s841_s15 = scalar_lea.hbm %s1158_s1, 256 }
   0x6   :  { %p842_p0 = scmp.ne.s32.totalorder %s1158_s1, %s841_s15  ;;  %p845_p1 = scmp.lt.u32.totalorder %s841_s15, %s1158_s1 }
   0x8   :  { %p847_p2 = pnand %p845_p1, %p842_p0 }
   0xa   :  { %850 = shalt.err (!%p847_p2)
}
   0xb   :  { %s851_s20 = scalar_lea.vmem %s36_s10, 256  ;;  %p856_p4 = scmp.lt.s32.totalorder %s36_s10, %s36_s10 }
   0xc   :  { %p852_p3 = scmp.ne.s32.totalorder %s36_s10, %s851_s20  ;;  %p857_p5 = scmp.lt.s32.totalorder %s851_s20, %s851_s20 }
   0xe   :  { %p858_p6 = por %p857_p5, %p856_p4 }
  0x10   :  { %p859_p7 = pnand %p858_p6, %p852_p3 }
  0x12   :  { %862 = shalt.err (!%p859_p7)
}
  0x13   :  { %s983_s21 = smov 64   ;;  %s984_s22 = smov 4  }
  0x14   :  { %41 = dma.hbm_to_vmem [thread:$0]  %s1158_s1, 256, %s36_s10, [#allocation6], %s983_s21, %s983_s21, %s984_s22  }
  0x15   :  { %s863_s27 = scalar_lea.hbm %s1162_s5, 2048 }
  0x16   :  { %p864_p8 = scmp.ne.s32.totalorder %s1162_s5, %s863_s27  ;;  %p867_p9 = scmp.lt.u32.totalorder %s863_s27, %s1162_s5 }
  0x18   :  { %p869_p10 = pnand %p867_p9, %p864_p8 }
  0x1a   :  { %872 = shalt.err (!%p869_p10)
}
  0x1b   :  { %s873_s13 = scalar_lea.vmem %s1044_s12, 2048  ;;  %p878_p12 = scmp.lt.s32.totalorder %s1044_s12, %s1044_s12 }
  0x1c   :  { %p874_p11 = scmp.ne.s32.totalorder %s1044_s12, %s873_s13  ;;  %p879_p13 = scmp.lt.s32.totalorder %s873_s13, %s873_s13 }
  0x1e   :  { %p880_p0 = por %p879_p13, %p878_p12 }
  0x20   :  { %p881_p1 = pnand %p880_p0, %p874_p11 }
  0x22   :  { %884 = shalt.err (!%p881_p1)
}
  0x23   :  { %s985_s1 = smov 128   ;;  %s986_s10 = smov 8  }
  0x24   :  { %69 = dma.hbm_to_vmem [thread:$0]  %s1162_s5, 2048, %s1044_s12, [#allocation9], %s985_s1, %s985_s1, %s986_s10  }
  0x25   :  { %s987_s16 = smov [#allocation2]   ;;  %s988_s18 = smov [#allocation7]  }
  0x26   :  { %s23_s17 = sshll.u32 %s987_s16, 4  ;;  %s49_s19 = sshll.u32 %s988_s18, 4  ;;  %s24_s17 = int_to_ptr.vmem [resolvable:$true] %s23_s17  ;;  %s1078_s19 = int_to_ptr.vmem [resolvable:$true] %s49_s19 }
  0x27   :  { %s885_s24 = scalar_lea.hbm %s1157_s0, 128 }
  0x28   :  { %p886_p2 = scmp.ne.s32.totalorder %s1157_s0, %s885_s24  ;;  %p889_p3 = scmp.lt.u32.totalorder %s885_s24, %s1157_s0 }
  0x2a   :  { %p891_p4 = pnand %p889_p3, %p886_p2 }
  0x2c   :  { %894 = shalt.err (!%p891_p4)
}
  0x2d   :  { %s895_s5 = scalar_lea.vmem %s24_s17, 128  ;;  %p900_p6 = scmp.lt.s32.totalorder %s24_s17, %s24_s17 }
  0x2e   :  { %p896_p5 = scmp.ne.s32.totalorder %s24_s17, %s895_s5  ;;  %p901_p7 = scmp.lt.s32.totalorder %s895_s5, %s895_s5 }
  0x30   :  { %p902_p8 = por %p901_p7, %p900_p6 }
  0x32   :  { %p903_p9 = pnand %p902_p8, %p896_p5 }
  0x34   :  { %906 = shalt.err (!%p903_p9)
}
  0x35   :  { %29 = dma.hbm_to_vmem [thread:$0]  %s1157_s0, 128, %s24_s17, [#allocation3], %s983_s21, %s983_s21, %s984_s22  }
  0x36   :  { %s907_s13 = scalar_lea.hbm %s1160_s3, 1024 }
  0x37   :  { %p908_p10 = scmp.ne.s32.totalorder %s1160_s3, %s907_s13  ;;  %p911_p11 = scmp.lt.u32.totalorder %s907_s13, %s1160_s3 }
  0x39   :  { %p913_p12 = pnand %p911_p11, %p908_p10 }
  0x3b   :  { %916 = shalt.err (!%p913_p12)
}
  0x3c   :  { %s917_s16 = scalar_lea.vmem %s1078_s19, 1024  ;;  %p922_p0 = scmp.lt.s32.totalorder %s1078_s19, %s1078_s19 }
  0x3d   :  { %p918_p13 = scmp.ne.s32.totalorder %s1078_s19, %s917_s16  ;;  %p923_p1 = scmp.lt.s32.totalorder %s917_s16, %s917_s16 }
  0x3f   :  { %p924_p2 = por %p923_p1, %p922_p0 }
  0x41   :  { %p925_p3 = pnand %p924_p2, %p918_p13 }
  0x43   :  { %928 = shalt.err (!%p925_p3)
}
  0x44   :  { %55 = dma.hbm_to_vmem [thread:$0]  %s1160_s3, 1024, %s1078_s19, [#allocation6], %s983_s21, %s983_s21, %s984_s22  }
  0x45   :  { %s989_s18 = smov [#allocation10]   ;;  %s929_s25 = scalar_lea.hbm %s1164_s7, 2048 }
  0x46   :  { %s77_s20 = sshll.u32 %s989_s18, 4  ;;  %p930_p4 = scmp.ne.s32.totalorder %s1164_s7, %s929_s25  ;;  %s78_s20 = int_to_ptr.vmem [resolvable:$true] %s77_s20 }
  0x47   :  { %p933_p5 = scmp.lt.u32.totalorder %s929_s25, %s1164_s7 }
  0x49   :  { %p935_p6 = pnand %p933_p5, %p930_p4 }
  0x4b   :  { %938 = shalt.err (!%p935_p6)
}
  0x4c   :  { %s939_s12 = scalar_lea.vmem %s78_s20, 2048  ;;  %p944_p8 = scmp.lt.s32.totalorder %s78_s20, %s78_s20 }
  0x4d   :  { %p940_p7 = scmp.ne.s32.totalorder %s78_s20, %s939_s12  ;;  %p945_p9 = scmp.lt.s32.totalorder %s939_s12, %s939_s12 }
  0x4f   :  { %p946_p10 = por %p945_p9, %p944_p8 }
  0x51   :  { %p947_p11 = pnand %p946_p10, %p940_p7 }
  0x53   :  { %950 = shalt.err (!%p947_p11)
}
  0x54   :  { %83 = dma.hbm_to_vmem [thread:$0]  %s1164_s7, 2048, %s78_s20, [#allocation9], %s983_s21, %s983_s21, %s984_s22  }
  0x55   :  { %973 = dma.done.wait [#allocation3], 128  }
  0x56   :  { %974 = vsyncadd [#allocation3], 4294967168 }
  0x57   :  { %975 = dma.done.wait [#allocation6], 1280  }
  0x58   :  { %976 = vsyncadd [#allocation6], 4294966016 }
  0x59   :  { %977 = dma.done.wait [#allocation9], 4096  }
  0x5a   :  { %978 = vsyncadd [#allocation9], 4294963200  ;;  %v990_v0 = vmov 0.0   ;;  %vm991_vm0 = vmmov 0   ;;  %v790_v1 = vld [vmem:[#allocation5] sm:$0xff]   ;;  %v791_v2 = vld [vmem:[#allocation5 + $0x8] sm:$0xff]  }
  0x5b   :  { %749 = vmatprep.subr.bf16.mxu0 %v990_v0  ;;  %753 = vmatprep.mubr.msk.bf16.mxu0 %vm991_vm0, %v990_v0  ;;  %v793_v3 = vld [vmem:[#allocation7] sm:$0xff]   ;;  %v792_v4 = vld [vmem:[#allocation2] sm:$0xff]   ;;  %vm132_vm1 = vcmask 261120   ;;  %v795_v6 = vld [vmem:[#allocation7 + $0x10] sm:$0xff]   ;;  %v992_v38 = vmov 0   ;;  %s993_s1 = smov [#allocation11]  }
  0x5c   :  { %757 = vmatprep.subr.bf16.mxu1 %v990_v0  ;;  %773 = vmatprep.mubr.msk.bf16.mxu1 %vm991_vm0, %v990_v0  ;;  %v794_v5 = vld [vmem:[#allocation7 + $0x8] sm:$0xff]   ;;  %v796_v7 = vld [vmem:[#allocation7 + $0x18] sm:$0xff]   ;;  %v797_v8 = vld [vmem:[#allocation7 + $0x20] sm:$0xff]   ;;  %s645_s10 = sshll.u32 %s993_s1, 4  ;;  %s646_s10 = int_to_ptr.vmem [resolvable:$true] %s645_s10 }
  0x5d   :  { %750 = vmatpush3.bf16.msra.mxu0 %v790_v1  ;;  %758 = vmatpush3.bf16.msra.mxu1 %v793_v3  ;;  %v798_v9 = vld [vmem:[#allocation7 + $0x28] sm:$0xff]   ;;  %v799_v10 = vld [vmem:[#allocation7 + $0x30] sm:$0xff]   ;;  %v800_v11 = vld [vmem:[#allocation7 + $0x38] sm:$0xff]   ;;  %v313_v1 = vlaneseq  ;;  %s951_s14 = scalar_lea.vmem %s646_s10, 128  ;;  %p956_p13 = scmp.lt.s32.totalorder %s646_s10, %s646_s10 }
  0x5e   :  { %751 = vmatprep.subr.bf16.mxu0 %v990_v0  ;;  %759 = vmatprep.subr.bf16.mxu1 %v990_v0  ;;  %v801_v12 = vld [vmem:[#allocation8] ss:$8 sps:$4 sm:$0xff]   ;;  %v803_v13 = vld [vmem:[#allocation8 + $0x4] ss:$8 sps:$4 sm:$0xff]   ;;  %v806_v14 = vld [vmem:[#allocation8 + $0x14] ss:$8 sps:$4 sm:$0xff]   ;;  %p952_p12 = scmp.ne.s32.totalorder %s646_s10, %s951_s14  ;;  %p957_p0 = scmp.lt.s32.totalorder %s951_s14, %s951_s14 }
  0x5f   :  { %v804_v15 = vld [vmem:[#allocation8 + $0x10] ss:$8 sps:$4 sm:$0xff]   ;;  %v809_v16 = vld [vmem:[#allocation8 + $0x24] ss:$8 sps:$4 sm:$0xff]   ;;  %v807_v17 = vld [vmem:[#allocation8 + $0x20] ss:$8 sps:$4 sm:$0xff]  }
  0x60   :  { %v812_v18 = vld [vmem:[#allocation8 + $0x34] ss:$8 sps:$4 sm:$0xff]   ;;  %v810_v19 = vld [vmem:[#allocation8 + $0x30] ss:$8 sps:$4 sm:$0xff]   ;;  %v815_v20 = vld [vmem:[#allocation8 + $0x44] ss:$8 sps:$4 sm:$0xff]   ;;  %p958_p1 = por %p957_p0, %p956_p13 }
  0x61   :  { %752 = vmatpush3.bf16.msra.mxu0 %v791_v2  ;;  %760 = vmatpush3.bf16.msra.mxu1 %v794_v5  ;;  %v813_v21 = vld [vmem:[#allocation8 + $0x40] ss:$8 sps:$4 sm:$0xff]   ;;  %v818_v22 = vld [vmem:[#allocation8 + $0x54] ss:$8 sps:$4 sm:$0xff]   ;;  %v816_v23 = vld [vmem:[#allocation8 + $0x50] ss:$8 sps:$4 sm:$0xff]  }
  0x62   :  { %761 = vmatprep.subr.bf16.mxu1 %v990_v0  ;;  %403 = vmatprep.subr.bf16.mxu0 %v803_v13  ;;  %v659_v24 = vld [vmem:[%s1159_s2] ss:$0 sm:$0xff]  ;;  %v821_v34 = vld [vmem:[#allocation8 + $0x64] ss:$8 sps:$4 sm:$0xff]   ;;  %v824_v36 = vld [vmem:[#allocation8 + $0x74] ss:$8 sps:$4 sm:$0xff]   ;;  %p959_p2 = pnand %p958_p1, %p952_p12 }
  0x63   :  { %v819_v35 = vld [vmem:[#allocation8 + $0x60] ss:$8 sps:$4 sm:$0xff]   ;;  %v822_v37 = vld [vmem:[#allocation8 + $0x70] ss:$8 sps:$4 sm:$0xff]   ;;  %v314_v2 = vshrl.u32 %v313_v1, 7 }
  0x64   :  { %754 = vmatmul.mubr.msk.bf16.vlgmr.msra.gmra.mrb[0].mxu0 %vm132_vm1, %v792_v4  ;;  %v825_v39 = vld [vmem:[#allocation10 + $0x40] sm:$0xff]   ;;  %v827_v41 = vld [vmem:[#allocation10 + $0x48] sm:$0xff]   ;;  %v829_v43 = vld [vmem:[#allocation10 + $0x50] sm:$0xff]  }
  0x65   :  { %762 = vmatpush3.bf16.msra.mxu1 %v795_v6  ;;  %404 = vmatpush1.bf16.msra.mxu0 %v801_v12  ;;  %v826_v40 = vld [vmem:[#allocation10] sm:$0xff]   ;;  %v828_v42 = vld [vmem:[#allocation10 + $0x8] sm:$0xff]   ;;  %v830_v44 = vld [vmem:[#allocation10 + $0x10] sm:$0xff]   ;;  %v315_v3 = vsub.s32 0, %v314_v2  ;;  %v319_v5 = vsub.s32 1, %v314_v2 }
  0x66   :  { %763 = vmatprep.subr.bf16.mxu1 %v990_v0  ;;  %405 = vmatprep.subr.bf16.mxu0 %v806_v14  ;;  %v831_v45 = vld [vmem:[#allocation10 + $0x58] sm:$0xff]   ;;  %v833_v47 = vld [vmem:[#allocation10 + $0x60] sm:$0xff]   ;;  %v835_v49 = vld [vmem:[#allocation10 + $0x68] sm:$0xff]  }
  0x67   :  { %435 = vmatprep.mubr.bf16.mxu0 %v992_v38  ;;  %v832_v46 = vld [vmem:[#allocation10 + $0x18] sm:$0xff]   ;;  %v834_v48 = vld [vmem:[#allocation10 + $0x20] sm:$0xff]   ;;  %v664_v50 = vld [vmem:[%s1161_s4] ss:$0 sm:$0xff] }
  0x68   :  { %v836_v60 = vld [vmem:[#allocation10 + $0x28] sm:$0xff]   ;;  %v837_v61 = vld [vmem:[#allocation10 + $0x70] sm:$0xff]   ;;  %v839_v63 = vld [vmem:[#allocation10 + $0x78] sm:$0xff]  }
  0x69   :  { %764 = vmatpush3.bf16.msra.mxu1 %v796_v7  ;;  %406 = vmatpush1.bf16.msra.mxu0 %v804_v15  ;;  %v838_v62 = vld [vmem:[#allocation10 + $0x30] sm:$0xff]   ;;  %v311_v4 = vld [vmem:[%s1163_s6] sm:$0x3] }
  0x6a   :  { %765 = vmatprep.subr.bf16.mxu1 %v990_v0  ;;  %407 = vmatprep.subr.bf16.mxu0 %v809_v16  ;;  %v316_v6 = vrot.slane %v311_v4, %v315_v3  ;;  %v320_v7 = vrot.slane %v311_v4, %v319_v5 }
  0x6d   :  { %766 = vmatpush3.bf16.msra.mxu1 %v797_v8  ;;  %408 = vmatpush1.bf16.msra.mxu0 %v807_v17 }
  0x6e   :  { %767 = vmatprep.subr.bf16.mxu1 %v990_v0  ;;  %409 = vmatprep.subr.bf16.mxu0 %v812_v18 }
  0x71   :  { %768 = vmatpush3.bf16.msra.mxu1 %v798_v9  ;;  %410 = vmatpush1.bf16.msra.mxu0 %v810_v19 }
  0x72   :  { %769 = vmatprep.subr.bf16.mxu1 %v990_v0  ;;  %411 = vmatprep.subr.bf16.mxu0 %v815_v20 }
  0x75   :  { %770 = vmatpush3.bf16.msra.mxu1 %v799_v10  ;;  %412 = vmatpush1.bf16.msra.mxu0 %v813_v21 }
  0x76   :  { %771 = vmatprep.subr.bf16.mxu1 %v990_v0  ;;  %413 = vmatprep.subr.bf16.mxu0 %v818_v22  ;;  %v840_v0 = vld [vmem:[#allocation10 + $0x38] sm:$0xff]  }
  0x79   :  { %772 = vmatpush3.bf16.msra.mxu1 %v800_v11  ;;  %414 = vmatpush1.bf16.msra.mxu0 %v816_v23  ;;  %v689_v23 = vld [vmem:[%s1165_s8] ss:$0 sm:$0xff] }
  0x7a   :  { %415 = vmatprep.subr.bf16.mxu0 %v821_v34  ;;  %727 = vmatprep.subr.bf16.mxu1 %v825_v39 }
  0x7d   :  { %416 = vmatpush1.bf16.msra.mxu0 %v819_v35 }
  0x7e   :  { %417 = vmatprep.subr.bf16.mxu0 %v824_v36 }
  0x81   :  { %418 = vmatpush1.bf16.msra.mxu0 %v822_v37 }
 0x137   :  { %v170_v25 = vpop.f32.mrb[0].mxu0 }
 0x138   :  { %v171_v26 = vadd.f32 %v659_v24, %v170_v25  ;;  %v755_v27 = vpop.f32.mrb[1].mxu0 }
 0x139   :  { %v173_v28 = vpop.f32.mrb[2].mxu0 }
 0x13a   :  { %v174_v29 = vadd.f32 %v659_v24, %v173_v28  ;;  %v756_v30 = vpop.f32.mrb[3].mxu0  ;;  %v177_v31 = vmax.f32 %v171_v26, 0.0 }
 0x13c   :  { %v178_v32 = vmax.f32 %v174_v29, 0.0 }
 0x13e   :  { %v179_v33 = vpack.c.bf16 %v178_v32, %v177_v31 }
 0x140   :  { %774 = vmatmul.mubr.bf16.vlgmr.msra.gmra.mrb[0].mxu1 %v179_v33 }
 0x141   :  { %728 = vmatpush3.bf16.msra.mxu1 %v826_v40 }
 0x142   :  { %729 = vmatprep.subr.bf16.mxu1 %v827_v41 }
 0x145   :  { %730 = vmatpush3.bf16.msra.mxu1 %v828_v42 }
 0x146   :  { %731 = vmatprep.subr.bf16.mxu1 %v829_v43 }
 0x149   :  { %732 = vmatpush3.bf16.msra.mxu1 %v830_v44 }
 0x14a   :  { %733 = vmatprep.subr.bf16.mxu1 %v831_v45 }
 0x14d   :  { %734 = vmatpush3.bf16.msra.mxu1 %v832_v46 }
 0x14e   :  { %735 = vmatprep.subr.bf16.mxu1 %v833_v47 }
 0x151   :  { %736 = vmatpush3.bf16.msra.mxu1 %v834_v48 }
 0x152   :  { %737 = vmatprep.subr.bf16.mxu1 %v835_v49 }
 0x155   :  { %738 = vmatpush3.bf16.msra.mxu1 %v836_v60 }
 0x156   :  { %739 = vmatprep.subr.bf16.mxu1 %v837_v61 }
 0x159   :  { %740 = vmatpush3.bf16.msra.mxu1 %v838_v62 }
 0x15a   :  { %741 = vmatprep.subr.bf16.mxu1 %v839_v63 }
 0x15d   :  { %742 = vmatpush3.bf16.msra.mxu1 %v840_v0 }
 0x213   :  { %v285_v51 = vpop.f32.mrb[0].mxu1 }
 0x214   :  { %v286_v52 = vadd.f32 %v664_v50, %v285_v51  ;;  %v775_v53 = vpop.f32.mrb[1].mxu1 }
 0x215   :  { %v288_v54 = vpop.f32.mrb[2].mxu1 }
 0x216   :  { %v289_v55 = vadd.f32 %v664_v50, %v288_v54  ;;  %v776_v56 = vpop.f32.mrb[3].mxu1  ;;  %v292_v57 = vmax.f32 %v286_v52, 0.0 }
 0x218   :  { %v293_v58 = vmax.f32 %v289_v55, 0.0 }
 0x21a   :  { %v294_v59 = vpack.c.bf16 %v293_v58, %v292_v57 }
 0x21c   :  { %436 = vmatmul.mubr.bf16.vlgmr.msra.gmra.mrb[4].mxu0 %v294_v59 }
 0x2ef   :  { %v437_v8 = vpop.f32.mrb[4].mxu0 }
 0x2f0   :  { %v438_v9 = vadd.f32 %v437_v8, %v316_v6  ;;  %v439_v10 = vpop.f32.mrb[5].mxu0 }
 0x2f1   :  { %v440_v11 = vadd.f32 %v439_v10, %v320_v7  ;;  %v441_v12 = vpop.f32.mrb[6].mxu0 }
 0x2f2   :  { %v442_v13 = vadd.f32 %v441_v12, %v316_v6  ;;  %v443_v14 = vpop.f32.mrb[7].mxu0  ;;  %v446_v16 = vmax.f32 %v438_v9, 0.0 }
 0x2f3   :  { %v444_v15 = vadd.f32 %v443_v14, %v320_v7  ;;  %v447_v18 = vmax.f32 %v440_v11, 0.0 }
 0x2f4   :  { %v448_v17 = vmax.f32 %v442_v13, 0.0 }
 0x2f5   :  { %v449_v19 = vmax.f32 %v444_v15, 0.0 }
 0x2f6   :  { %v450_v20 = vpack.c.bf16 %v448_v17, %v446_v16 }
 0x2f7   :  { %v451_v21 = vpack.c.bf16 %v449_v19, %v447_v18 }
 0x2f9   :  { %619 = vmatprep.mubr.bf16.mxu1 %v451_v21 }
 0x2fa   :  { %620 = vmatmul.mubr.bf16.vlgmr.msra.gmra.mrb[4].mxu1 %v450_v20 }
 0x3cd   :  { %v743_v22 = vpop.f32.mrb[4].mxu1 }
 0x3ce   :  { %v744_v24 = vpop.f32.mrb[5].mxu1 }
 0x3cf   :  { %v745_v25 = vadd.f32 %v744_v24, %v743_v22  ;;  %v746_v26 = vpop.f32.mrb[6].mxu1 }
 0x3d0   :  { %v747_v27 = vpop.f32.mrb[7].mxu1 }
 0x3d1   :  { %v622_v28 = vadd.f32 %v745_v25, %v689_v23  ;;  %v748_v29 = vadd.f32 %v747_v27, %v746_v26 }
 0x3d3   :  { %v625_v30 = vadd.f32 %v748_v29, %v689_v23  ;;  %v628_v31 = vmax.f32 %v622_v28, 0.0 }
 0x3d5   :  { %v629_v32 = vmax.f32 %v625_v30, 0.0 }
 0x3d7   :  { %v713_v33 = vpack.c.bf16 %v629_v32, %v628_v31 }
 0x3d9   :  { %714 = vst [vmem:[#allocation11] sm:$0xff] %v713_v33  }
 0x3da   :  { %962 = shalt.err (!%p959_p2)
}
 0x3db   :  { %s963_s16 = scalar_lea.hbm %s1166_s9, 128 }
 0x3dc   :  { %p964_p3 = scmp.ne.s32.totalorder %s1166_s9, %s963_s16  ;;  %p967_p4 = scmp.lt.u32.totalorder %s963_s16, %s1166_s9 }
 0x3de   :  { %p969_p5 = pnand %p967_p4, %p964_p3 }
 0x3e0   :  { %972 = shalt.err (!%p969_p5)
}
 0x3e1   :  { %651 = dma.vmem_to_hbm [thread:$0]  %s646_s10, 128, %s1166_s9, [#allocation4], %s983_s21, %s983_s21, %s984_s22  }
 0x3e2   :  { %979 = dma.done.wait [#allocation4], 128  }
 0x3e3   :  { %980 = vsyncadd [#allocation4], 4294967168 }
 0x3e4   :  { %655 = vsyncpa [#allocation3], 1 }
 0x3e5   :  { %656 = vsyncpa [#allocation6], 1 }
 0x3e6   :  { %657 = vsyncpa [#allocation9], 1 }
 0x3e7   :  { %658 = vsyncpa [#allocation4], 1 }

</bundles_post_ra>
